<compile_context>
chip_gen: v7x
topology: tpu7x:2x2x1
jax: 0.10.0
libtpu: 0.0.40
codegen_flags: <defaults>
</compile_context>

<pallas_src>
import math
import functools

import jax
import jax.numpy as jnp
from jax.experimental import pallas as pl
from jax.experimental.pallas import tpu as pltpu


def _layernorm(x, gamma, beta, eps=1e-5):
    # x: (N, E) fp32; gamma/beta: (1, E).  rsqrt lowers to the EUP slot.
    mu = jnp.mean(x, axis=-1, keepdims=True)
    xc = x - mu
    var = jnp.mean(xc * xc, axis=-1, keepdims=True)
    return xc * jax.lax.rsqrt(var + eps) * gamma + beta


def encoder_stack_kernel(x_ref, wqkv_ref, bqkv_ref, wo_ref, bo_ref,
                         w1_ref, b1_ref, w2_ref, b2_ref,
                         ln1w_ref, ln1b_ref, ln2w_ref, ln2b_ref,
                         out_ref, act_ref, *, batch_tile, seq, nhead, ff_chunk):
    layer = pl.program_id(1)

    # Layer 0: seed the VMEM-resident activation from the (once-DMA'd) batch tile.
    @pl.when(layer == 0)
    def _():
        act_ref[...] = x_ref[...].astype(jnp.float32)

    x = act_ref[...]                                   # (bt*S, E), fp32
    n, E = x.shape
    dh = E // nhead
    scale = 1.0 / math.sqrt(dh)

    # ---- fused QKV projection: bf16 operands, fp32 accumulation ----
    qkv = jnp.dot(x.astype(jnp.bfloat16), wqkv_ref[...],
                  preferred_element_type=jnp.float32) + bqkv_ref[...]

    # ---- multi-head self-attention, batched over the batch-tile dim ----
    ctx_heads = []
    for h in range(nhead):                             # static head loop
        c0 = h * dh
        qh = qkv[:, c0:c0 + dh].reshape(batch_tile, seq, dh).astype(jnp.bfloat16)
        kh = qkv[:, E + c0:E + c0 + dh].reshape(batch_tile, seq, dh).astype(jnp.bfloat16)
        vh = qkv[:, 2 * E + c0:2 * E + c0 + dh].reshape(batch_tile, seq, dh).astype(jnp.bfloat16)
        s = jnp.einsum('bqd,bkd->bqk', qh, kh,
                       preferred_element_type=jnp.float32) * scale
        s = s - jnp.max(s, axis=-1, keepdims=True)     # softmax stats stay fp32
        p = jnp.exp(s)
        # approx reciprocal: ~2^-12 rel. error, well below bf16 matmul noise.
        p = p * pl.reciprocal(jnp.sum(p, axis=-1, keepdims=True), approx=True)
        ctx = jnp.einsum('bqk,bkd->bqd', p.astype(jnp.bfloat16), vh,
                         preferred_element_type=jnp.float32)
        ctx_heads.append(ctx.reshape(n, dh))
    ctx_all = ctx_heads[0] if nhead == 1 else jnp.concatenate(ctx_heads, axis=-1)
    # Single K=E output projection (no per-head K=dh matmuls).
    attn = jnp.dot(ctx_all.astype(jnp.bfloat16), wo_ref[...],
                   preferred_element_type=jnp.float32) + bo_ref[...]

    # ---- residual + LayerNorm 1 (fp32) ----
    y = _layernorm(x + attn, ln1w_ref[...], ln1b_ref[...])
    y_b = y.astype(jnp.bfloat16)

    # ---- feed-forward (ReLU), tiled over the hidden dim ----
    dim_ff = w1_ref.shape[1]
    h2 = jnp.zeros((n, E), jnp.float32)
    for c0 in range(0, dim_ff, ff_chunk):              # bounds the (n, dim_ff) transient
        h1 = jnp.dot(y_b, w1_ref[:, c0:c0 + ff_chunk],
                     preferred_element_type=jnp.float32) + b1_ref[:, c0:c0 + ff_chunk]
        h1 = jnp.maximum(h1, 0.0)
        h2 = h2 + jnp.dot(h1.astype(jnp.bfloat16), w2_ref[c0:c0 + ff_chunk, :],
                          preferred_element_type=jnp.float32)

    # ---- residual + LayerNorm 2 (fp32) ----
    z = _layernorm(y + h2 + b2_ref[...], ln2w_ref[...], ln2b_ref[...])

    # Keep the activation VMEM-resident for the next layer.
    act_ref[...] = z

    @pl.when(layer == pl.num_programs(1) - 1)
    def _():
        out_ref[...] = z.astype(out_ref.dtype)


def _vmem_limit_bytes(packed_params, rows, d_model, ff_chunk):
    """Scoped-VMEM budget: resident params (double-buffered by the default
    pipeline) + fp32 activation scratch + I/O tiles + per-layer transients,
    plus headroom; capped at 64 MiB so it also fits v7x physical VMEM."""
    param_b = 2 * sum(int(a.size) * a.dtype.itemsize for a in packed_params)
    act_b = rows * d_model * 4
    io_b = 2 * 2 * rows * d_model * 4
    trans_b = rows * (3 * d_model * 6 + max(d_model, ff_chunk) * 6 + 4 * d_model)
    budget = param_b + act_b + io_b + trans_b + (8 << 20)
    return int(min(max(budget, 16 << 20), 64 << 20))


def transformer_encoder(src, packed_params, num_layers, *, nhead,
                        batch_tile=1, ff_chunk=None):
    """Runs the whole num_layers stack in a single fused pallas_call."""
    B, S, E = src.shape
    assert E % nhead == 0
    assert B % batch_tile == 0
    rows = batch_tile * S

    dim_ff = packed_params[4].shape[1]               # w1 packed as (E, dim_ff)
    if ff_chunk is None:
        ff_chunk = dim_ff if dim_ff <= 1024 else 1024
    if dim_ff % ff_chunk:
        ff_chunk = dim_ff

    x2d = src.reshape(B * S, E)
    kernel = functools.partial(encoder_stack_kernel, batch_tile=batch_tile,
                               seq=S, nhead=nhead, ff_chunk=ff_chunk)

    const_map = lambda b, l: (0, 0)                  # weights resident across the whole grid
    tile_map = lambda b, l: (b, 0)                   # activation tile follows the batch axis
    in_specs = [pl.BlockSpec((rows, E), tile_map)]
    in_specs += [pl.BlockSpec(p.shape, const_map) for p in packed_params]
    out_specs = pl.BlockSpec((rows, E), tile_map)

    out2d = pl.pallas_call(
        kernel,
        out_shape=jax.ShapeDtypeStruct((B * S, E), src.dtype),
        grid_spec=pltpu.PrefetchScalarGridSpec(
            num_scalar_prefetch=0,
            grid=(B // batch_tile, num_layers),      # batch tiles outer, layers inner
            in_specs=in_specs,
            out_specs=out_specs,
            scratch_shapes=[pltpu.VMEM((rows, E), jnp.float32)]),
        compiler_params=pltpu.CompilerParams(
            dimension_semantics=("parallel", "arbitrary"),
            vmem_limit_bytes=_vmem_limit_bytes(packed_params, rows, E, ff_chunk)),
    )(x2d, *packed_params)
    return out2d.reshape(B, S, E)


def init_encoder_layer_params(key, d_model, dim_ff):
    """PyTorch-layout params (nn.Linear weight: (out, in)).  All layers share
    these because TransformerEncoder deep-copies one encoder_layer."""
    ks = jax.random.split(key, 6)
    s = 0.05
    return dict(
        wqkv=s * jax.random.normal(ks[0], (3 * d_model, d_model), jnp.float32),
        bqkv=jnp.zeros((3 * d_model,), jnp.float32),
        wo=s * jax.random.normal(ks[1], (d_model, d_model), jnp.float32),
        bo=jnp.zeros((d_model,), jnp.float32),
        w1=s * jax.random.normal(ks[2], (dim_ff, d_model), jnp.float32),
        b1=0.01 * jax.random.normal(ks[3], (dim_ff,), jnp.float32),
        w2=s * jax.random.normal(ks[4], (d_model, dim_ff), jnp.float32),
        b2=0.01 * jax.random.normal(ks[5], (d_model,), jnp.float32),
        ln1w=jnp.ones((d_model,), jnp.float32),
        ln1b=jnp.zeros((d_model,), jnp.float32),
        ln2w=jnp.ones((d_model,), jnp.float32),
        ln2b=jnp.zeros((d_model,), jnp.float32),
    )


def pack_params_for_kernel(p):
    """Host-side one-time packing:
      * matmul weights transposed to (in, out) layout and cast to bf16
        (lane-dense `x @ w` feeds, native MXU operand dtype),
      * biases / LayerNorm params kept fp32 as (1, n) rows (all elementwise
        math stays fp32 on every TPU generation)."""
    bf = lambda v: v.T.astype(jnp.bfloat16)
    r = lambda v: v[None, :].astype(jnp.float32)
    return (bf(p["wqkv"]), r(p["bqkv"]), bf(p["wo"]), r(p["bo"]),
            bf(p["w1"]), r(p["b1"]), bf(p["w2"]), r(p["b2"]),
            r(p["ln1w"]), r(p["ln1b"]), r(p["ln2w"]), r(p["ln2b"]))


def encoder_stack_reference(src, p, num_layers, *, nhead):
    """Pure-JAX fp32 reference of the same post-LN encoder stack."""
    B, S, E = src.shape
    dh = E // nhead
    x = src.reshape(B * S, E)
    for _ in range(num_layers):
        qkv = x @ p["wqkv"].T + p["bqkv"]
        q, k, v = qkv[:, :E], qkv[:, E:2 * E], qkv[:, 2 * E:]
        heads = []
        for h in range(nhead):
            sl = slice(h * dh, (h + 1) * dh)
            qh = q[:, sl].reshape(B, S, dh)
            kh = k[:, sl].reshape(B, S, dh)
            vh = v[:, sl].reshape(B, S, dh)
            s = jnp.einsum('bqd,bkd->bqk', qh, kh) / math.sqrt(dh)
            pm = jax.nn.softmax(s, axis=-1)
            heads.append(jnp.einsum('bqk,bkd->bqd', pm, vh).reshape(B * S, dh))
        attn = jnp.concatenate(heads, axis=-1) @ p["wo"].T + p["bo"]
        y = _layernorm(x + attn, p["ln1w"][None, :], p["ln1b"][None, :])
        h1 = jax.nn.relu(y @ p["w1"].T + p["b1"])
        x = _layernorm(y + h1 @ p["w2"].T + p["b2"],
                       p["ln2w"][None, :], p["ln2b"][None, :])
    return x.reshape(B, S, E)


if __name__ == "__main__":
    B, S, E, H, F, L = 2, 8, 32, 4, 64, 2   # batch, seq, d_model, nhead, ffn, num_layers
    key = jax.random.PRNGKey(0)
    kx, kp = jax.random.split(key)

    src = jax.random.normal(kx, (B, S, E), jnp.float32)
    params = init_encoder_layer_params(kp, E, F)
    packed = pack_params_for_kernel(params)

    out = transformer_encoder(src, packed, L, nhead=H, batch_tile=1)
    out = jax.block_until_ready(out)

    ref = encoder_stack_reference(src, params, L, nhead=H)

    assert out.shape == (B, S, E)
    assert bool(jnp.all(jnp.isfinite(out)))
    # Loose tolerance: kernel uses bf16 MXU operands (fp32 accumulation).
    assert bool(jnp.allclose(out, ref, atol=1e-1, rtol=1e-1))
    print("KERNEL_OK")
</pallas_src>

<mosaic_0001>
module attributes {stable_mosaic.version = 11 : i64} {
  func.func @encoder_stack_kernel(%arg0: i32, %arg1: i32, %arg2: memref<8x32xf32, #tpu.memory_space<vmem>>, %arg3: memref<32x96xbf16, #tpu.memory_space<vmem>>, %arg4: memref<1x96xf32, #tpu.memory_space<vmem>>, %arg5: memref<32x32xbf16, #tpu.memory_space<vmem>>, %arg6: memref<1x32xf32, #tpu.memory_space<vmem>>, %arg7: memref<32x64xbf16, #tpu.memory_space<vmem>>, %arg8: memref<1x64xf32, #tpu.memory_space<vmem>>, %arg9: memref<64x32xbf16, #tpu.memory_space<vmem>>, %arg10: memref<1x32xf32, #tpu.memory_space<vmem>>, %arg11: memref<1x32xf32, #tpu.memory_space<vmem>>, %arg12: memref<1x32xf32, #tpu.memory_space<vmem>>, %arg13: memref<1x32xf32, #tpu.memory_space<vmem>>, %arg14: memref<1x32xf32, #tpu.memory_space<vmem>>, %arg15: memref<8x32xf32, #tpu.memory_space<vmem>>, %arg16: memref<8x32xf32, #tpu.memory_space<vmem>>) attributes {dimension_semantics = [#tpu.dimension_semantics<parallel>, #tpu.dimension_semantics<arbitrary>], iteration_bounds = array<i64: 2, 2>, scalar_prefetch = 0 : i64, scratch_operands = 1 : i64, tpu.core_type = #tpu.core_type<tc>, window_params = [{transform_indices = @transform_0, window_bounds = array<i64: 8, 32>}, {pipeline_mode = #tpu.pipeline_mode<synchronous>, transform_indices = @transform_1, window_bounds = array<i64: 32, 96>}, {pipeline_mode = #tpu.pipeline_mode<synchronous>, transform_indices = @transform_2, window_bounds = array<i64: 1, 96>}, {pipeline_mode = #tpu.pipeline_mode<synchronous>, transform_indices = @transform_3, window_bounds = array<i64: 32, 32>}, {pipeline_mode = #tpu.pipeline_mode<synchronous>, transform_indices = @transform_4, window_bounds = array<i64: 1, 32>}, {pipeline_mode = #tpu.pipeline_mode<synchronous>, transform_indices = @transform_5, window_bounds = array<i64: 32, 64>}, {pipeline_mode = #tpu.pipeline_mode<synchronous>, transform_indices = @transform_6, window_bounds = array<i64: 1, 64>}, {pipeline_mode = #tpu.pipeline_mode<synchronous>, transform_indices = @transform_7, window_bounds = array<i64: 64, 32>}, {pipeline_mode = #tpu.pipeline_mode<synchronous>, transform_indices = @transform_8, window_bounds = array<i64: 1, 32>}, {pipeline_mode = #tpu.pipeline_mode<synchronous>, transform_indices = @transform_9, window_bounds = array<i64: 1, 32>}, {pipeline_mode = #tpu.pipeline_mode<synchronous>, transform_indices = @transform_10, window_bounds = array<i64: 1, 32>}, {pipeline_mode = #tpu.pipeline_mode<synchronous>, transform_indices = @transform_11, window_bounds = array<i64: 1, 32>}, {pipeline_mode = #tpu.pipeline_mode<synchronous>, transform_indices = @transform_12, window_bounds = array<i64: 1, 32>}, {transform_indices = @transform_13, window_bounds = array<i64: 8, 32>}]} {
    %c0_i32 = arith.constant 0 : i32
    %0 = arith.cmpi eq, %arg1, %c0_i32 : i32
    %1 = arith.extui %0 : i1 to i32
    %c0_i32_0 = arith.constant 0 : i32
    %2 = arith.cmpi ne, %1, %c0_i32_0 : i32
    scf.if %2 {
      %c0_64 = arith.constant 0 : index
      %c0_65 = arith.constant 0 : index
      %183 = vector.load %arg2[%c0_64, %c0_65] : memref<8x32xf32, #tpu.memory_space<vmem>>, vector<8x32xf32>
      %c0_66 = arith.constant 0 : index
      %c0_67 = arith.constant 0 : index
      %184 = vector.load %arg16[%c0_66, %c0_67] : memref<8x32xf32, #tpu.memory_space<vmem>>, vector<8x32xf32>
      tpu.vector_store %arg16[%c0_66, %c0_67], %183 {strides = array<i32>} : memref<8x32xf32, #tpu.memory_space<vmem>>, vector<8x32xf32>,
    } else {
    }
    %c0 = arith.constant 0 : index
    %c0_1 = arith.constant 0 : index
    %3 = vector.load %arg16[%c0, %c0_1] : memref<8x32xf32, #tpu.memory_space<vmem>>, vector<8x32xf32>
    %4 = arith.truncf %3 : vector<8x32xf32> to vector<8x32xbf16>
    %c0_2 = arith.constant 0 : index
    %c0_3 = arith.constant 0 : index
    %5 = vector.load %arg3[%c0_2, %c0_3] : memref<32x96xbf16, #tpu.memory_space<vmem>>, vector<32x96xbf16>
    %cst = arith.constant dense<0.000000e+00> : vector<8x96xf32>
    %6 = tpu.matmul %4, %5, %cst {dimension_numbers = #tpu.dot_dimension_numbers<[1], [0], [0], [1], [0, 0, 1, 1], [], []>} : vector<8x32xbf16>, vector<32x96xbf16>, vector<8x96xf32> -> vector<8x96xf32>
    %c0_4 = arith.constant 0 : index
    %c0_5 = arith.constant 0 : index
    %7 = vector.load %arg4[%c0_4, %c0_5] : memref<1x96xf32, #tpu.memory_space<vmem>>, vector<1x96xf32>
    %8 = vector.broadcast %7 : vector<1x96xf32> to vector<8x96xf32>
    %9 = arith.addf %6, %8 : vector<8x96xf32>
    %10 = vector.extract_strided_slice %9 {offsets = [0, 0], sizes = [8, 8], strides = [1, 1]} : vector<8x96xf32> to vector<8x8xf32>
    %11 = vector.shape_cast %10 : vector<8x8xf32> to vector<1x8x8xf32>
    %12 = arith.truncf %11 : vector<1x8x8xf32> to vector<1x8x8xbf16>
    %13 = vector.extract_strided_slice %9 {offsets = [0, 32], sizes = [8, 8], strides = [1, 1]} : vector<8x96xf32> to vector<8x8xf32>
    %14 = vector.shape_cast %13 : vector<8x8xf32> to vector<1x8x8xf32>
    %15 = arith.truncf %14 : vector<1x8x8xf32> to vector<1x8x8xbf16>
    %16 = vector.extract_strided_slice %9 {offsets = [0, 64], sizes = [8, 8], strides = [1, 1]} : vector<8x96xf32> to vector<8x8xf32>
    %17 = vector.shape_cast %16 : vector<8x8xf32> to vector<1x8x8xf32>
    %18 = arith.truncf %17 : vector<1x8x8xf32> to vector<1x8x8xbf16>
    "tpu.trace_start"() <{level = 10 : i32, message = "bqd,bkd->bqk"}> : () -> ()
    %cst_6 = arith.constant dense<0.000000e+00> : vector<1x8x8xf32>
    %19 = tpu.matmul %12, %15, %cst_6 {dimension_numbers = #tpu.dot_dimension_numbers<[2], [2], [1], [1], [0, 0, 0, 1, 1, 1], [0], [0]>} : vector<1x8x8xbf16>, vector<1x8x8xbf16>, vector<1x8x8xf32> -> vector<1x8x8xf32>
    "tpu.trace_stop"() : () -> ()
    %cst_7 = arith.constant 0.353553385 : f32
    %20 = vector.broadcast %cst_7 : f32 to vector<1x8x8xf32>
    %21 = arith.mulf %19, %20 : vector<1x8x8xf32>
    %cst_8 = arith.constant dense<0xFF800000> : vector<1x8xf32>
    %22 = vector.multi_reduction <maximumf>, %21, %cst_8 [2] : vector<1x8x8xf32> to vector<1x8xf32>
    %23 = vector.shape_cast %22 : vector<1x8xf32> to vector<1x8x1xf32>
    %24 = vector.broadcast %23 : vector<1x8x1xf32> to vector<1x8x8xf32>
    %25 = arith.subf %21, %24 : vector<1x8x8xf32>
    %26 = math.exp %25 : vector<1x8x8xf32>
    %cst_9 = arith.constant dense<0.000000e+00> : vector<1x8xf32>
    %27 = vector.multi_reduction <add>, %26, %cst_9 [2] : vector<1x8x8xf32> to vector<1x8xf32>
    %28 = vector.shape_cast %27 : vector<1x8xf32> to vector<1x8x1xf32>
    %29 = tpu.reciprocal %28 {approx = true} : vector<1x8x1xf32> -> vector<1x8x1xf32>
    %30 = vector.broadcast %29 : vector<1x8x1xf32> to vector<1x8x8xf32>
    %31 = arith.mulf %26, %30 : vector<1x8x8xf32>
    %32 = arith.truncf %31 : vector<1x8x8xf32> to vector<1x8x8xbf16>
    "tpu.trace_start"() <{level = 10 : i32, message = "bqk,bkd->bqd"}> : () -> ()
    %cst_10 = arith.constant dense<0.000000e+00> : vector<1x8x8xf32>
    %33 = tpu.matmul %32, %18, %cst_10 {dimension_numbers = #tpu.dot_dimension_numbers<[2], [1], [1], [2], [0, 0, 0, 1, 1, 2], [0], [0]>} : vector<1x8x8xbf16>, vector<1x8x8xbf16>, vector<1x8x8xf32> -> vector<1x8x8xf32>
    "tpu.trace_stop"() : () -> ()
    %34 = vector.shape_cast %33 : vector<1x8x8xf32> to vector<8x8xf32>
    %35 = vector.extract_strided_slice %9 {offsets = [0, 8], sizes = [8, 8], strides = [1, 1]} : vector<8x96xf32> to vector<8x8xf32>
    %36 = vector.shape_cast %35 : vector<8x8xf32> to vector<1x8x8xf32>
    %37 = arith.truncf %36 : vector<1x8x8xf32> to vector<1x8x8xbf16>
    %38 = vector.extract_strided_slice %9 {offsets = [0, 40], sizes = [8, 8], strides = [1, 1]} : vector<8x96xf32> to vector<8x8xf32>
    %39 = vector.shape_cast %38 : vector<8x8xf32> to vector<1x8x8xf32>
    %40 = arith.truncf %39 : vector<1x8x8xf32> to vector<1x8x8xbf16>
    %41 = vector.extract_strided_slice %9 {offsets = [0, 72], sizes = [8, 8], strides = [1, 1]} : vector<8x96xf32> to vector<8x8xf32>
    %42 = vector.shape_cast %41 : vector<8x8xf32> to vector<1x8x8xf32>
    %43 = arith.truncf %42 : vector<1x8x8xf32> to vector<1x8x8xbf16>
    "tpu.trace_start"() <{level = 10 : i32, message = "bqd,bkd->bqk"}> : () -> ()
    %cst_11 = arith.constant dense<0.000000e+00> : vector<1x8x8xf32>
    %44 = tpu.matmul %37, %40, %cst_11 {dimension_numbers = #tpu.dot_dimension_numbers<[2], [2], [1], [1], [0, 0, 0, 1, 1, 1], [0], [0]>} : vector<1x8x8xbf16>, vector<1x8x8xbf16>, vector<1x8x8xf32> -> vector<1x8x8xf32>
    "tpu.trace_stop"() : () -> ()
    %cst_12 = arith.constant 0.353553385 : f32
    %45 = vector.broadcast %cst_12 : f32 to vector<1x8x8xf32>
    %46 = arith.mulf %44, %45 : vector<1x8x8xf32>
    %cst_13 = arith.constant dense<0xFF800000> : vector<1x8xf32>
    %47 = vector.multi_reduction <maximumf>, %46, %cst_13 [2] : vector<1x8x8xf32> to vector<1x8xf32>
    %48 = vector.shape_cast %47 : vector<1x8xf32> to vector<1x8x1xf32>
    %49 = vector.broadcast %48 : vector<1x8x1xf32> to vector<1x8x8xf32>
    %50 = arith.subf %46, %49 : vector<1x8x8xf32>
    %51 = math.exp %50 : vector<1x8x8xf32>
    %cst_14 = arith.constant dense<0.000000e+00> : vector<1x8xf32>
    %52 = vector.multi_reduction <add>, %51, %cst_14 [2] : vector<1x8x8xf32> to vector<1x8xf32>
    %53 = vector.shape_cast %52 : vector<1x8xf32> to vector<1x8x1xf32>
    %54 = tpu.reciprocal %53 {approx = true} : vector<1x8x1xf32> -> vector<1x8x1xf32>
    %55 = vector.broadcast %54 : vector<1x8x1xf32> to vector<1x8x8xf32>
    %56 = arith.mulf %51, %55 : vector<1x8x8xf32>
    %57 = arith.truncf %56 : vector<1x8x8xf32> to vector<1x8x8xbf16>
    "tpu.trace_start"() <{level = 10 : i32, message = "bqk,bkd->bqd"}> : () -> ()
    %cst_15 = arith.constant dense<0.000000e+00> : vector<1x8x8xf32>
    %58 = tpu.matmul %57, %43, %cst_15 {dimension_numbers = #tpu.dot_dimension_numbers<[2], [1], [1], [2], [0, 0, 0, 1, 1, 2], [0], [0]>} : vector<1x8x8xbf16>, vector<1x8x8xbf16>, vector<1x8x8xf32> -> vector<1x8x8xf32>
    "tpu.trace_stop"() : () -> ()
    %59 = vector.shape_cast %58 : vector<1x8x8xf32> to vector<8x8xf32>
    %60 = vector.extract_strided_slice %9 {offsets = [0, 16], sizes = [8, 8], strides = [1, 1]} : vector<8x96xf32> to vector<8x8xf32>
    %61 = vector.shape_cast %60 : vector<8x8xf32> to vector<1x8x8xf32>
    %62 = arith.truncf %61 : vector<1x8x8xf32> to vector<1x8x8xbf16>
    %63 = vector.extract_strided_slice %9 {offsets = [0, 48], sizes = [8, 8], strides = [1, 1]} : vector<8x96xf32> to vector<8x8xf32>
    %64 = vector.shape_cast %63 : vector<8x8xf32> to vector<1x8x8xf32>
    %65 = arith.truncf %64 : vector<1x8x8xf32> to vector<1x8x8xbf16>
    %66 = vector.extract_strided_slice %9 {offsets = [0, 80], sizes = [8, 8], strides = [1, 1]} : vector<8x96xf32> to vector<8x8xf32>
    %67 = vector.shape_cast %66 : vector<8x8xf32> to vector<1x8x8xf32>
    %68 = arith.truncf %67 : vector<1x8x8xf32> to vector<1x8x8xbf16>
    "tpu.trace_start"() <{level = 10 : i32, message = "bqd,bkd->bqk"}> : () -> ()
    %cst_16 = arith.constant dense<0.000000e+00> : vector<1x8x8xf32>
    %69 = tpu.matmul %62, %65, %cst_16 {dimension_numbers = #tpu.dot_dimension_numbers<[2], [2], [1], [1], [0, 0, 0, 1, 1, 1], [0], [0]>} : vector<1x8x8xbf16>, vector<1x8x8xbf16>, vector<1x8x8xf32> -> vector<1x8x8xf32>
    "tpu.trace_stop"() : () -> ()
    %cst_17 = arith.constant 0.353553385 : f32
    %70 = vector.broadcast %cst_17 : f32 to vector<1x8x8xf32>
    %71 = arith.mulf %69, %70 : vector<1x8x8xf32>
    %cst_18 = arith.constant dense<0xFF800000> : vector<1x8xf32>
    %72 = vector.multi_reduction <maximumf>, %71, %cst_18 [2] : vector<1x8x8xf32> to vector<1x8xf32>
    %73 = vector.shape_cast %72 : vector<1x8xf32> to vector<1x8x1xf32>
    %74 = vector.broadcast %73 : vector<1x8x1xf32> to vector<1x8x8xf32>
    %75 = arith.subf %71, %74 : vector<1x8x8xf32>
    %76 = math.exp %75 : vector<1x8x8xf32>
    %cst_19 = arith.constant dense<0.000000e+00> : vector<1x8xf32>
    %77 = vector.multi_reduction <add>, %76, %cst_19 [2] : vector<1x8x8xf32> to vector<1x8xf32>
    %78 = vector.shape_cast %77 : vector<1x8xf32> to vector<1x8x1xf32>
    %79 = tpu.reciprocal %78 {approx = true} : vector<1x8x1xf32> -> vector<1x8x1xf32>
    %80 = vector.broadcast %79 : vector<1x8x1xf32> to vector<1x8x8xf32>
    %81 = arith.mulf %76, %80 : vector<1x8x8xf32>
    %82 = arith.truncf %81 : vector<1x8x8xf32> to vector<1x8x8xbf16>
    "tpu.trace_start"() <{level = 10 : i32, message = "bqk,bkd->bqd"}> : () -> ()
    %cst_20 = arith.constant dense<0.000000e+00> : vector<1x8x8xf32>
    %83 = tpu.matmul %82, %68, %cst_20 {dimension_numbers = #tpu.dot_dimension_numbers<[2], [1], [1], [2], [0, 0, 0, 1, 1, 2], [0], [0]>} : vector<1x8x8xbf16>, vector<1x8x8xbf16>, vector<1x8x8xf32> -> vector<1x8x8xf32>
    "tpu.trace_stop"() : () -> ()
    %84 = vector.shape_cast %83 : vector<1x8x8xf32> to vector<8x8xf32>
    %85 = vector.extract_strided_slice %9 {offsets = [0, 24], sizes = [8, 8], strides = [1, 1]} : vector<8x96xf32> to vector<8x8xf32>
    %86 = vector.shape_cast %85 : vector<8x8xf32> to vector<1x8x8xf32>
    %87 = arith.truncf %86 : vector<1x8x8xf32> to vector<1x8x8xbf16>
    %88 = vector.extract_strided_slice %9 {offsets = [0, 56], sizes = [8, 8], strides = [1, 1]} : vector<8x96xf32> to vector<8x8xf32>
    %89 = vector.shape_cast %88 : vector<8x8xf32> to vector<1x8x8xf32>
    %90 = arith.truncf %89 : vector<1x8x8xf32> to vector<1x8x8xbf16>
    %91 = vector.extract_strided_slice %9 {offsets = [0, 88], sizes = [8, 8], strides = [1, 1]} : vector<8x96xf32> to vector<8x8xf32>
    %92 = vector.shape_cast %91 : vector<8x8xf32> to vector<1x8x8xf32>
    %93 = arith.truncf %92 : vector<1x8x8xf32> to vector<1x8x8xbf16>
    "tpu.trace_start"() <{level = 10 : i32, message = "bqd,bkd->bqk"}> : () -> ()
    %cst_21 = arith.constant dense<0.000000e+00> : vector<1x8x8xf32>
    %94 = tpu.matmul %87, %90, %cst_21 {dimension_numbers = #tpu.dot_dimension_numbers<[2], [2], [1], [1], [0, 0, 0, 1, 1, 1], [0], [0]>} : vector<1x8x8xbf16>, vector<1x8x8xbf16>, vector<1x8x8xf32> -> vector<1x8x8xf32>
    "tpu.trace_stop"() : () -> ()
    %cst_22 = arith.constant 0.353553385 : f32
    %95 = vector.broadcast %cst_22 : f32 to vector<1x8x8xf32>
    %96 = arith.mulf %94, %95 : vector<1x8x8xf32>
    %cst_23 = arith.constant dense<0xFF800000> : vector<1x8xf32>
    %97 = vector.multi_reduction <maximumf>, %96, %cst_23 [2] : vector<1x8x8xf32> to vector<1x8xf32>
    %98 = vector.shape_cast %97 : vector<1x8xf32> to vector<1x8x1xf32>
    %99 = vector.broadcast %98 : vector<1x8x1xf32> to vector<1x8x8xf32>
    %100 = arith.subf %96, %99 : vector<1x8x8xf32>
    %101 = math.exp %100 : vector<1x8x8xf32>
    %cst_24 = arith.constant dense<0.000000e+00> : vector<1x8xf32>
    %102 = vector.multi_reduction <add>, %101, %cst_24 [2] : vector<1x8x8xf32> to vector<1x8xf32>
    %103 = vector.shape_cast %102 : vector<1x8xf32> to vector<1x8x1xf32>
    %104 = tpu.reciprocal %103 {approx = true} : vector<1x8x1xf32> -> vector<1x8x1xf32>
    %105 = vector.broadcast %104 : vector<1x8x1xf32> to vector<1x8x8xf32>
    %106 = arith.mulf %101, %105 : vector<1x8x8xf32>
    %107 = arith.truncf %106 : vector<1x8x8xf32> to vector<1x8x8xbf16>
    "tpu.trace_start"() <{level = 10 : i32, message = "bqk,bkd->bqd"}> : () -> ()
    %cst_25 = arith.constant dense<0.000000e+00> : vector<1x8x8xf32>
    %108 = tpu.matmul %107, %93, %cst_25 {dimension_numbers = #tpu.dot_dimension_numbers<[2], [1], [1], [2], [0, 0, 0, 1, 1, 2], [0], [0]>} : vector<1x8x8xbf16>, vector<1x8x8xbf16>, vector<1x8x8xf32> -> vector<1x8x8xf32>
    "tpu.trace_stop"() : () -> ()
    %109 = vector.shape_cast %108 : vector<1x8x8xf32> to vector<8x8xf32>
    %110 = tpu.concatenate %34, %59, %84, %109 in 1 : vector<8x8xf32>, vector<8x8xf32>, vector<8x8xf32>, vector<8x8xf32> -> vector<8x32xf32>
    %111 = arith.truncf %110 : vector<8x32xf32> to vector<8x32xbf16>
    %c0_26 = arith.constant 0 : index
    %c0_27 = arith.constant 0 : index
    %112 = vector.load %arg5[%c0_26, %c0_27] : memref<32x32xbf16, #tpu.memory_space<vmem>>, vector<32x32xbf16>
    %cst_28 = arith.constant dense<0.000000e+00> : vector<8x32xf32>
    %113 = tpu.matmul %111, %112, %cst_28 {dimension_numbers = #tpu.dot_dimension_numbers<[1], [0], [0], [1], [0, 0, 1, 1], [], []>} : vector<8x32xbf16>, vector<32x32xbf16>, vector<8x32xf32> -> vector<8x32xf32>
    %c0_29 = arith.constant 0 : index
    %c0_30 = arith.constant 0 : index
    %114 = vector.load %arg6[%c0_29, %c0_30] : memref<1x32xf32, #tpu.memory_space<vmem>>, vector<1x32xf32>
    %115 = vector.broadcast %114 : vector<1x32xf32> to vector<8x32xf32>
    %116 = arith.addf %113, %115 : vector<8x32xf32>
    %117 = arith.addf %3, %116 : vector<8x32xf32>
    %c0_31 = arith.constant 0 : index
    %c0_32 = arith.constant 0 : index
    %118 = vector.load %arg11[%c0_31, %c0_32] : memref<1x32xf32, #tpu.memory_space<vmem>>, vector<1x32xf32>
    %c0_33 = arith.constant 0 : index
    %c0_34 = arith.constant 0 : index
    %119 = vector.load %arg12[%c0_33, %c0_34] : memref<1x32xf32, #tpu.memory_space<vmem>>, vector<1x32xf32>
    %cst_35 = arith.constant dense<0.000000e+00> : vector<8xf32>
    %120 = vector.multi_reduction <add>, %117, %cst_35 [1] : vector<8x32xf32> to vector<8xf32>
    %121 = vector.shape_cast %120 : vector<8xf32> to vector<8x1xf32>
    %cst_36 = arith.constant 3.200000e+01 : f32
    %122 = vector.broadcast %cst_36 : f32 to vector<8x1xf32>
    %123 = arith.divf %121, %122 : vector<8x1xf32>
    %124 = vector.broadcast %123 : vector<8x1xf32> to vector<8x32xf32>
    %125 = arith.subf %117, %124 : vector<8x32xf32>
    %126 = arith.mulf %125, %125 : vector<8x32xf32>
    %cst_37 = arith.constant dense<0.000000e+00> : vector<8xf32>
    %127 = vector.multi_reduction <add>, %126, %cst_37 [1] : vector<8x32xf32> to vector<8xf32>
    %128 = vector.shape_cast %127 : vector<8xf32> to vector<8x1xf32>
    %cst_38 = arith.constant 3.200000e+01 : f32
    %129 = vector.broadcast %cst_38 : f32 to vector<8x1xf32>
    %130 = arith.divf %128, %129 : vector<8x1xf32>
    %cst_39 = arith.constant 9.99999974E-6 : f32
    %131 = vector.broadcast %cst_39 : f32 to vector<8x1xf32>
    %132 = arith.addf %130, %131 : vector<8x1xf32>
    %133 = math.rsqrt %132 : vector<8x1xf32>
    %134 = vector.broadcast %133 : vector<8x1xf32> to vector<8x32xf32>
    %135 = arith.mulf %125, %134 : vector<8x32xf32>
    %136 = vector.broadcast %118 : vector<1x32xf32> to vector<8x32xf32>
    %137 = arith.mulf %135, %136 : vector<8x32xf32>
    %138 = vector.broadcast %119 : vector<1x32xf32> to vector<8x32xf32>
    %139 = arith.addf %137, %138 : vector<8x32xf32>
    %140 = arith.truncf %139 : vector<8x32xf32> to vector<8x32xbf16>
    %cst_40 = arith.constant 0.000000e+00 : f32
    %141 = vector.broadcast %cst_40 : f32 to vector<8x32xf32>
    %c0_41 = arith.constant 0 : index
    %c0_42 = arith.constant 0 : index
    %142 = vector.load %arg7[%c0_41, %c0_42] : memref<32x64xbf16, #tpu.memory_space<vmem>>, vector<32x64xbf16>
    %cst_43 = arith.constant dense<0.000000e+00> : vector<8x64xf32>
    %143 = tpu.matmul %140, %142, %cst_43 {dimension_numbers = #tpu.dot_dimension_numbers<[1], [0], [0], [1], [0, 0, 1, 1], [], []>} : vector<8x32xbf16>, vector<32x64xbf16>, vector<8x64xf32> -> vector<8x64xf32>
    %c0_44 = arith.constant 0 : index
    %c0_45 = arith.constant 0 : index
    %144 = vector.load %arg8[%c0_44, %c0_45] : memref<1x64xf32, #tpu.memory_space<vmem>>, vector<1x64xf32>
    %145 = vector.broadcast %144 : vector<1x64xf32> to vector<8x64xf32>
    %146 = arith.addf %143, %145 : vector<8x64xf32>
    %cst_46 = arith.constant 0.000000e+00 : f32
    %147 = vector.broadcast %cst_46 : f32 to vector<8x64xf32>
    %148 = arith.maximumf %146, %147 : vector<8x64xf32>
    %149 = arith.truncf %148 : vector<8x64xf32> to vector<8x64xbf16>
    %c0_47 = arith.constant 0 : index
    %c0_48 = arith.constant 0 : index
    %150 = vector.load %arg9[%c0_47, %c0_48] : memref<64x32xbf16, #tpu.memory_space<vmem>>, vector<64x32xbf16>
    %cst_49 = arith.constant dense<0.000000e+00> : vector<8x32xf32>
    %151 = tpu.matmul %149, %150, %cst_49 {dimension_numbers = #tpu.dot_dimension_numbers<[1], [0], [0], [1], [0, 0, 1, 1], [], []>} : vector<8x64xbf16>, vector<64x32xbf16>, vector<8x32xf32> -> vector<8x32xf32>
    %152 = arith.addf %141, %151 : vector<8x32xf32>
    %153 = arith.addf %139, %152 : vector<8x32xf32>
    %c0_50 = arith.constant 0 : index
    %c0_51 = arith.constant 0 : index
    %154 = vector.load %arg10[%c0_50, %c0_51] : memref<1x32xf32, #tpu.memory_space<vmem>>, vector<1x32xf32>
    %155 = vector.broadcast %154 : vector<1x32xf32> to vector<8x32xf32>
    %156 = arith.addf %153, %155 : vector<8x32xf32>
    %c0_52 = arith.constant 0 : index
    %c0_53 = arith.constant 0 : index
    %157 = vector.load %arg13[%c0_52, %c0_53] : memref<1x32xf32, #tpu.memory_space<vmem>>, vector<1x32xf32>
    %c0_54 = arith.constant 0 : index
    %c0_55 = arith.constant 0 : index
    %158 = vector.load %arg14[%c0_54, %c0_55] : memref<1x32xf32, #tpu.memory_space<vmem>>, vector<1x32xf32>
    %cst_56 = arith.constant dense<0.000000e+00> : vector<8xf32>
    %159 = vector.multi_reduction <add>, %156, %cst_56 [1] : vector<8x32xf32> to vector<8xf32>
    %160 = vector.shape_cast %159 : vector<8xf32> to vector<8x1xf32>
    %cst_57 = arith.constant 3.200000e+01 : f32
    %161 = vector.broadcast %cst_57 : f32 to vector<8x1xf32>
    %162 = arith.divf %160, %161 : vector<8x1xf32>
    %163 = vector.broadcast %162 : vector<8x1xf32> to vector<8x32xf32>
    %164 = arith.subf %156, %163 : vector<8x32xf32>
    %165 = arith.mulf %164, %164 : vector<8x32xf32>
    %cst_58 = arith.constant dense<0.000000e+00> : vector<8xf32>
    %166 = vector.multi_reduction <add>, %165, %cst_58 [1] : vector<8x32xf32> to vector<8xf32>
    %167 = vector.shape_cast %166 : vector<8xf32> to vector<8x1xf32>
    %cst_59 = arith.constant 3.200000e+01 : f32
    %168 = vector.broadcast %cst_59 : f32 to vector<8x1xf32>
    %169 = arith.divf %167, %168 : vector<8x1xf32>
    %cst_60 = arith.constant 9.99999974E-6 : f32
    %170 = vector.broadcast %cst_60 : f32 to vector<8x1xf32>
    %171 = arith.addf %169, %170 : vector<8x1xf32>
    %172 = math.rsqrt %171 : vector<8x1xf32>
    %173 = vector.broadcast %172 : vector<8x1xf32> to vector<8x32xf32>
    %174 = arith.mulf %164, %173 : vector<8x32xf32>
    %175 = vector.broadcast %157 : vector<1x32xf32> to vector<8x32xf32>
    %176 = arith.mulf %174, %175 : vector<8x32xf32>
    %177 = vector.broadcast %158 : vector<1x32xf32> to vector<8x32xf32>
    %178 = arith.addf %176, %177 : vector<8x32xf32>
    %c0_61 = arith.constant 0 : index
    %c0_62 = arith.constant 0 : index
    %179 = vector.load %arg16[%c0_61, %c0_62] : memref<8x32xf32, #tpu.memory_space<vmem>>, vector<8x32xf32>
    tpu.vector_store %arg16[%c0_61, %c0_62], %178 {strides = array<i32>} : memref<8x32xf32, #tpu.memory_space<vmem>>, vector<8x32xf32>,
    %c1_i32 = arith.constant 1 : i32
    %180 = arith.cmpi eq, %arg1, %c1_i32 : i32
    %181 = arith.extui %180 : i1 to i32
    %c0_i32_63 = arith.constant 0 : i32
    %182 = arith.cmpi ne, %181, %c0_i32_63 : i32
    scf.if %182 {
      %c0_64 = arith.constant 0 : index
      %c0_65 = arith.constant 0 : index
      %183 = vector.load %arg15[%c0_64, %c0_65] : memref<8x32xf32, #tpu.memory_space<vmem>>, vector<8x32xf32>
      tpu.vector_store %arg15[%c0_64, %c0_65], %178 {strides = array<i32>} : memref<8x32xf32, #tpu.memory_space<vmem>>, vector<8x32xf32>,
    } else {
    }
    return
  }
  func.func @transform_0(%arg0: i32, %arg1: i32) -> (i32, i32) {
    %c0_i32 = arith.constant 0 : i32
    %c0_i32_0 = arith.constant 0 : i32
    return %arg0, %c0_i32 : i32, i32
  }
  func.func @transform_1(%arg0: i32, %arg1: i32) -> (i32, i32) {
    %c0_i32 = arith.constant 0 : i32
    %c0_i32_0 = arith.constant 0 : i32
    %c0_i32_1 = arith.constant 0 : i32
    return %c0_i32, %c0_i32_0 : i32, i32
  }
  func.func @transform_2(%arg0: i32, %arg1: i32) -> (i32, i32) {
    %c0_i32 = arith.constant 0 : i32
    %c0_i32_0 = arith.constant 0 : i32
    %c0_i32_1 = arith.constant 0 : i32
    return %c0_i32, %c0_i32_0 : i32, i32
  }
  func.func @transform_3(%arg0: i32, %arg1: i32) -> (i32, i32) {
    %c0_i32 = arith.constant 0 : i32
    %c0_i32_0 = arith.constant 0 : i32
    %c0_i32_1 = arith.constant 0 : i32
    return %c0_i32, %c0_i32_0 : i32, i32
  }
  func.func @transform_4(%arg0: i32, %arg1: i32) -> (i32, i32) {
    %c0_i32 = arith.constant 0 : i32
    %c0_i32_0 = arith.constant 0 : i32
    %c0_i32_1 = arith.constant 0 : i32
    return %c0_i32, %c0_i32_0 : i32, i32
  }
  func.func @transform_5(%arg0: i32, %arg1: i32) -> (i32, i32) {
    %c0_i32 = arith.constant 0 : i32
    %c0_i32_0 = arith.constant 0 : i32
    %c0_i32_1 = arith.constant 0 : i32
    return %c0_i32, %c0_i32_0 : i32, i32
  }
  func.func @transform_6(%arg0: i32, %arg1: i32) -> (i32, i32) {
    %c0_i32 = arith.constant 0 : i32
    %c0_i32_0 = arith.constant 0 : i32
    %c0_i32_1 = arith.constant 0 : i32
    return %c0_i32, %c0_i32_0 : i32, i32
  }
  func.func @transform_7(%arg0: i32, %arg1: i32) -> (i32, i32) {
    %c0_i32 = arith.constant 0 : i32
    %c0_i32_0 = arith.constant 0 : i32
    %c0_i32_1 = arith.constant 0 : i32
    return %c0_i32, %c0_i32_0 : i32, i32
  }
  func.func @transform_8(%arg0: i32, %arg1: i32) -> (i32, i32) {
    %c0_i32 = arith.constant 0 : i32
    %c0_i32_0 = arith.constant 0 : i32
    %c0_i32_1 = arith.constant 0 : i32
    return %c0_i32, %c0_i32_0 : i32, i32
  }
  func.func @transform_9(%arg0: i32, %arg1: i32) -> (i32, i32) {
    %c0_i32 = arith.constant 0 : i32
    %c0_i32_0 = arith.constant 0 : i32
    %c0_i32_1 = arith.constant 0 : i32
    return %c0_i32, %c0_i32_0 : i32, i32
  }
  func.func @transform_10(%arg0: i32, %arg1: i32) -> (i32, i32) {
    %c0_i32 = arith.constant 0 : i32
    %c0_i32_0 = arith.constant 0 : i32
    %c0_i32_1 = arith.constant 0 : i32
    return %c0_i32, %c0_i32_0 : i32, i32
  }
  func.func @transform_11(%arg0: i32, %arg1: i32) -> (i32, i32) {
    %c0_i32 = arith.constant 0 : i32
    %c0_i32_0 = arith.constant 0 : i32
    %c0_i32_1 = arith.constant 0 : i32
    return %c0_i32, %c0_i32_0 : i32, i32
  }
  func.func @transform_12(%arg0: i32, %arg1: i32) -> (i32, i32) {
    %c0_i32 = arith.constant 0 : i32
    %c0_i32_0 = arith.constant 0 : i32
    %c0_i32_1 = arith.constant 0 : i32
    return %c0_i32, %c0_i32_0 : i32, i32
  }
  func.func @transform_13(%arg0: i32, %arg1: i32) -> (i32, i32) {
    %c0_i32 = arith.constant 0 : i32
    %c0_i32_0 = arith.constant 0 : i32
    return %arg0, %c0_i32 : i32, i32
  }
}

</mosaic_0001>

<bundles_post_ra>
// kernel: tpu_custom_call.1
= control target key start
LH: loop header
LB: loop body
LE: loop exit
PB: predicated region body
PF: predicated region fallthrough
CT: control target
= control target key end

     0   :  { %18 = vsyncpa [#allocation4], 0  ;;  %s2213_s0 = inlined_call_operand.vmem [shape: f32[16,32], index: 0, kind: input, shape index: {}]   ;;  %s2214_s1 = inlined_call_operand.vmem [shape: bf16[32,96], index: 1, kind: input, shape index: {}]   ;;  %s2215_s2 = inlined_call_operand.vmem [shape: f32[1,96], index: 2, kind: input, shape index: {}]   ;;  %s2216_s3 = inlined_call_operand.vmem [shape: bf16[32,32], index: 3, kind: input, shape index: {}]   ;;  %s2217_s4 = inlined_call_operand.vmem [shape: f32[1,32], index: 4, kind: input, shape index: {}]   ;;  %s2218_s5 = inlined_call_operand.hbm [shape: bf16[32,64], index: 5, kind: input, shape index: {}]   ;;  %s2219_s6 = inlined_call_operand.vmem [shape: f32[1,64], index: 6, kind: input, shape index: {}]   ;;  %s2220_s7 = inlined_call_operand.vmem [shape: bf16[64,32], index: 7, kind: input, shape index: {}]   ;;  %s2221_s8 = inlined_call_operand.vmem [shape: f32[1,32], index: 8, kind: input, shape index: {}]   ;;  %s2222_s9 = inlined_call_operand.vmem [shape: f32[1,32], index: 9, kind: input, shape index: {}]   ;;  %s2223_s10 = inlined_call_operand.vmem [shape: f32[1,32], index: 10, kind: input, shape index: {}]   ;;  %s2224_s11 = inlined_call_operand.vmem [shape: f32[1,32], index: 11, kind: input, shape index: {}]   ;;  %s2225_s12 = inlined_call_operand.vmem [shape: f32[1,32], index: 12, kind: input, shape index: {}]   ;;  %s2226_s13 = inlined_call_operand.hbm [shape: f32[16,32], index: 13, kind: output, shape index: {}]  }
   0x1   :  { %19 = vsyncpa [#allocation5], 0 }
   0x2   :  { %21 = vsyncpa [#allocation5 + $0x1], 0  ;;  %s1893_s25 = smov 0   ;;  %s1895_s26 = smov 0  }
   0x3   :  { %s1897_s27 = smov 0   ;;  %s1899_s28 = smov 0  }
   0x4   :  { %s1901_s29 = smov 0   ;;  %s1903_s30 = smov 0  }
   0x5   :  { %s1905_s14 = smov 0   ;;  %s1907_s15 = smov 0  }
   0x6 LB: > { %2238 = sst [smem:[#allocation9_spill]] %s1773_s25  ;;  %s1386_s16 = sadd.s32 4294967295, %s1801_s15   ;;  %s1801_s15 = sphi %s1907_s15, %s27_s15   ;;  %s1797_s14 = sphi %s1905_s14, %s2262_s14   ;;  %s1793_s30 = sphi %s1903_s30, %s2261_s30   ;;  %s1789_s29 = sphi %s1901_s29, %s2266_s29   ;;  %s1785_s28 = sphi %s1899_s28, %s2259_s28   ;;  %s1781_s27 = sphi %s1897_s27, %s2265_s27   ;;  %s1777_s26 = sphi %s1895_s26, %s2264_s26   ;;  %s1773_s25 = sphi %s1893_s25, %s2263_s25  }
   0x7   : > { %2239 = sst [smem:[#allocation10_spill]] %s1793_s30  ;;  %s1387_s17 = sadd.s32 4294967294, %s1801_s15  }
   0x8   : > { %2240 = sst [smem:[#allocation11_spill]] %s1797_s14  ;;  %s36_s18 = sadd.s32 1, %s1793_s30 }
   0x9   : > { %2241 = sst [smem:[#allocation12_spill]] %s1801_s15  ;;  %s39_s19 = sadd.s32 1, %s1797_s14 }
   0xa   : > { %p37_p0 = scmp.ge.s32.totalorder %s36_s18, 2  ;;  %s324_s20 = sadd.s32 1, %s1781_s27 }
   0xb   : > { %p334_p1 = scmp.ne.s32.totalorder %s1781_s27, %s1777_s26  ;;  %p335_p2 = scmp.eq.s32.totalorder %s1386_s16, 3 }
   0xc   : > { %s2268_s18 = smov (%p37_p0, %s36_s18), 0  ;;  %s2270_s19 = smov (!%p37_p0, %s39_s19), %s1797_s14 }
   0xd   : > { %2242 = sst [smem:[#allocation13_spill]] %s2268_s18  ;;  %p1943_p3 = por %p335_p2, %p334_p1 }
   0xe   : > { %p340_p4 = scmp.ne.s32.totalorder %s1777_s26, %s1773_s25  ;;  %p41_p5 = scmp.ge.s32.totalorder %s2270_s19, 2 }
   0xf   : > { %s2243_s21 = scalar_select %p1943_p3, 1, 0 }
  0x10   : > { %p341_p6 = scmp.eq.s32.totalorder %s1387_s17, 3  ;;  %p1388_p7 = scmp.ge.s32.totalorder %s1801_s15, 1 }
  0x11   : > { %p348_p8 = scmp.lt.s32.totalorder %s1801_s15, 5  ;;  %s2272_s19 = smov (%p41_p5, %s2270_s19), 0 }
  0x12   : > { %2244 = sst [smem:[#allocation14_spill]] %s2272_s19  ;;  %p1953_p9 = por %p341_p6, %p340_p4 }
  0x13   : > { %p1957_p10 = pnand %p1388_p7, %p348_p8  ;;  %s321_s24 = ssub.s32 %s1797_s14, %s2272_s19 }
  0x14   : > { %s2245_s22 = scalar_select %p1953_p9, 1, 0 }
  0x15   : > { %s2247_s23 = scalar_select %p1957_p10, 1, 0 }
  0x16   : > { %2246 = sst [smem:[#allocation15_spill]] %s2245_s22  ;;  %p322_p11 = scmp.eq.s32.totalorder %s321_s24, 0 }
  0x17   : > { %p1551_p12 = pneg %p1957_p10  ;;  %p1965_p13 = scmp.eq.s32.totalorder %s1386_s16, 0 }
  0x18   : > { %s1970_s18 = scalar_select %p322_p11, %s1781_s27, %s324_s20  }
  0x19   : > { %s2248_s17 = scalar_select %p1965_p13, 1, 0 }
  0x1a   : > { %2249 = sst [smem:[#allocation16_spill]] %s1970_s18  ;;  %s1803_s30 = smov [#allocation3]  }
  0x1b   : > { %s372_s25 = sshll.u32 %s1803_s30, 4  ;;  %p1974_p0 = pnand %p1965_p13, %p1551_p12  ;;  %s373_s25 = int_to_ptr.vmem [resolvable:$true] %s372_s25 }
  0x1c   : > { %s1675_s14 = scalar_lea.hbm %s2218_s5, 256 }
  0x1d   : > { %p1676_p1 = scmp.ne.s32.totalorder %s2218_s5, %s1675_s14  ;;  %p1677_p2 = pneg %p1974_p0 }
  0x1e   : > { %p1682_p6 = scmp.lt.u32.totalorder %s1675_s14, %s2218_s5 }
  0x1f   : > { %p1678_p4 = pnand %p1677_p2, %p1676_p1 }
  0x21   : > { %p1679_p5 = pneg %p1678_p4 }
  0x23   : > { %p1684_p7 = pnand %p1682_p6, %p1679_p5 }
  0x25   : > { %1687 = shalt.err (!%p1684_p7)
}
  0x26   : > { %s1688_s18 = scalar_lea.vmem %s373_s25, 256  ;;  %p1696_p9 = scmp.lt.s32.totalorder %s373_s25, %s373_s25 }
  0x27   : > { %p1689_p8 = scmp.ne.s32.totalorder %s373_s25, %s1688_s18  ;;  %p1697_p3 = scmp.lt.s32.totalorder %s1688_s18, %s1688_s18 }
  0x29   : > { %p1691_p11 = pnand %p1689_p8, %p1677_p2  ;;  %p1698_p13 = por %p1697_p3, %p1696_p9 }
  0x2b   : > { %p1692_p12 = pneg %p1691_p11 }
  0x2d   : > { %p1699_p10 = pnand %p1698_p13, %p1692_p12 }
  0x2f   : > { %1702 = shalt.err (!%p1699_p10)
}
  0x30   : > { %s1804_s15 = smov 64   ;;  %s1805_s19 = smov 4  }
  0x31   : > { %1554 = dma.hbm_to_vmem [thread:$0]  (!%p1974_p0), %s2218_s5, 256, %s373_s25, [#allocation4], %s1804_s15, %s1804_s15, %s1805_s19  }
  0x32   : > { %p2251_p1 = scmp.ne.s32.totalorder %s2247_s23, 0 }
  0x33   : > { %p2252_p4 = scmp.ne.s32.totalorder (!%p2251_p1), %s2248_s17, 0 }
  0x34   : > { %416 = sbr.rel (%p2251_p1) target bundleno = 2644 (0xa54), region = 72 }
  0x3b   : > { %1764 = dma.done.wait (%p2252_p4), [#allocation4], 256  }
  0x3c   : > { %1766 = vsyncadd (%p2252_p4), [#allocation4], 4294967040  ;;  %s456_s14 = sand.u32 1, %s1777_s26   ;;  %p459_p3 = scmp.lt.s32.totalorder %s1789_s29, 1 }
  0x3d   : > { %s2004_s18 = sshll.u32 %s456_s14, 3  ;;  %p1395_p9 = scmp.ne.s32.totalorder %s1785_s28, 0 }
  0x3e   : > { %s460_s25 = scalar_select %p459_p3, %s1789_s29, 1 }
  0x3f   : > { %s458_s15 = scalar_lea.vmem [#allocation6], %s2004_s18  ;;  %467 = sbr.rel (%p1395_p9) target bundleno = 70 (0x46), region = 80  ;;  %vm469_vm0 = vcmask (!%p1395_p9), 261120  }
  0x40   : > { %s1394_s22 = sshll.u32 %s460_s25, 3 }
  0x41   : > { %s462_s20 = scalar_lea.vmem %s2213_s0, %s1394_s22 }
  0x42   : > { %v468_v0 = vld [vmem:[%s462_s20] sm:$0xff] (!%p1395_p9) }
  0x43   : > { %470 = vst.msk [vmem:[#allocation2] sm:$0xff] (!%p1395_p9), %vm469_vm0, %v468_v0 }
  0x46 PF: > { %v1645_v1 = vld [vmem:[%s2214_s1] sm:$0xff]   ;;  %v1806_v2 = vmov 0.0   ;;  %v1646_v3 = vld [vmem:[%s2214_s1 + $0x8] sm:$0xff]   ;;  %vm1807_vm1 = vmmov 0   ;;  %vm496_vm2 = vcmask 261120   ;;  %s1808_s23 = smov 120  }
  0x47   : > { %1461 = vmatprep.subr.bf16.mxu0 %v1806_v2  ;;  %1469 = vmatprep.subr.bf16.mxu1 %v1806_v2  ;;  %v1396_v6 = vld [vmem:[%s2215_s2] ss:$0 sm:$0xff]  ;;  %s1809_s30 = smov 96   ;;  %s1810_s20 = smov 80   ;;  %vm544_vm3 = vcmask 64512   ;;  %vm609_vm4 = vcmask 1043456  }
  0x48   : > { %1462 = vmatpush3.bf16.msra.mxu0 %v1645_v1  ;;  %1465 = vmatprep.mubr.msk.bf16.mxu0 %vm1807_vm1, %v1806_v2  ;;  %s1811_s17 = smov 88   ;;  %s1812_s19 = smov 72   ;;  %vm999_vm5 = vcmask 130048   ;;  %vm1001_vm6 = vcmask 195584   ;;  %vm1202_vm7 = vcmask 523264  }
  0x49   : > { %1463 = vmatprep.subr.bf16.mxu0 %v1806_v2  ;;  %1471 = vmatprep.mubr.msk.bf16.mxu1 %vm1807_vm1, %v1806_v2  ;;  %s1813_s24 = smov 112   ;;  %s1814_s16 = smov 104  }
  0x4a   : > { %v2022_v4 = vld [vmem:[#allocation2] sm:$0xff]  ;;  %s1815_s25 = smov 56   ;;  %s1816_s22 = smov 64  }
  0x4b   : > { %v472_v5 = vpack.c.bf16 %v2022_v4, %v2022_v4  ;;  %p1426_p10 = scmp.ne.s32.totalorder %s1785_s28, 1 }
  0x4c   : > { %1464 = vmatpush3.bf16.msra.mxu0 %v1646_v3 }
  0x4d   : > { %1475 = vmatprep.subr.bf16.mxu0 %v1806_v2 }
  0x4f   : > { %1466 = vmatmul.mubr.msk.bf16.vlgmr.msra.gmra.mrb[0].mxu0 %vm496_vm2, %v472_v5 }
  0x50   : > { %1477 = vmatprep.mubr.msk.bf16.mxu0 %vm1807_vm1, %v1806_v2 }
 0x122   : > { %v534_v7 = vpop.f32.mrb[0].mxu0 }
 0x123   : > { %v535_v8 = vadd.f32 %v1396_v6, %v534_v7  ;;  %v1467_v9 = vpop.f32.mrb[1].mxu0 }
 0x124   : > { %v537_v10 = vpop.f32.mrb[2].mxu0 }
 0x125   : > { %v2036_v11 = vpack.c.bf16 %v535_v8, %v535_v8  ;;  %v1468_v12 = vpop.f32.mrb[3].mxu0 }
 0x127   : > { %653 = vrot.lane.b32.xlu1 %v2036_v11, %s1808_s23  ;;  %542 = vrot.lane.b32.xlu0 %v2036_v11, %s1809_s30  ;;  %s1817_s23 = smov 40   ;;  %s1818_s30 = smov 48  }
 0x12b   : > { %766 = vrot.lane.b32.xlu1 %v2036_v11, %s1810_s20  ;;  %655 = vrot.lane.b32.xlu0 %v2036_v11, %s1811_s17  ;;  %s1819_s20 = smov 8  }
 0x12f   : > { %877 = vrot.lane.b32.xlu1 %v2036_v11, %s1812_s19  ;;  %764 = vrot.lane.b32.xlu0 %v2036_v11, %s1813_s24 }
 0x133   : > { %875 = vrot.lane.b32.xlu0 %v2036_v11, %s1814_s16 }
 0x199   : > { %v543_v13 = vpop.permute.xlu0 %542  ;;  %v654_v16 = vpop.permute.xlu1 %653 }
 0x19a   : > { %v549_v14 = vsel %vm544_vm3, %v543_v13, 0 }
 0x19b   : > { %1470 = vmatpush3.bf16.xpose.msra.mxu1 %v549_v14 }
 0x19c   : > { %1481 = vmatprep.subr.bf16.mxu1 %v1806_v2 }
 0x19d   : > { %v656_v15 = vpop.permute.xlu0 %655  ;;  %v767_v18 = vpop.permute.xlu1 %766 }
 0x19e   : > { %v661_v17 = vsel %vm544_vm3, %v656_v15, 0  ;;  %v772_v19 = vsel %vm544_vm3, %v767_v18, 0 }
 0x1a1   : > { %v878_v20 = vpop.permute.xlu1 %877  ;;  %v765_v21 = vpop.permute.xlu0 %764 }
 0x1a2   : > { %1472 = vmatmul.mubr.msk.bf16.vlgmr.msra.gmra.mrb[0].mxu1 %vm544_vm3, %v2036_v11  ;;  %v883_v22 = vsel %vm544_vm3, %v878_v20, 0 }
 0x1a3   : > { %1482 = vmatpush3.bf16.xpose.msra.mxu1 %v661_v17  ;;  %1483 = vmatprep.mubr.msk.bf16.mxu1 %vm1807_vm1, %v1806_v2 }
 0x1a4   : > { %1493 = vmatprep.subr.bf16.mxu1 %v1806_v2 }
 0x1a5   : > { %v876_v23 = vpop.permute.xlu0 %875 }
 0x1aa   : > { %1484 = vmatmul.mubr.msk.bf16.vlgmr.msra.gmra.mrb[4].mxu1 %vm544_vm3, %v654_v16 }
 0x1ab   : > { %1494 = vmatpush3.bf16.xpose.msra.mxu1 %v772_v19  ;;  %1495 = vmatprep.mubr.msk.bf16.mxu1 %vm1807_vm1, %v1806_v2 }
 0x1ac   : > { %1505 = vmatprep.subr.bf16.mxu1 %v1806_v2 }
 0x1b2   : > { %1496 = vmatmul.mubr.msk.bf16.vlgmr.msra.gmra.mrb[8].mxu1 %vm544_vm3, %v765_v21 }
 0x1b3   : > { %1506 = vmatpush3.bf16.xpose.msra.mxu1 %v883_v22  ;;  %1507 = vmatprep.mubr.msk.bf16.mxu1 %vm1807_vm1, %v1806_v2 }
 0x1b4   : > { %1517 = vmatprep.subr.bf16.mxu1 %v1806_v2 }
 0x1ba   : > { %1508 = vmatmul.mubr.msk.bf16.vlgmr.msra.gmra.mrb[12].mxu1 %vm544_vm3, %v876_v23 }
 0x1bb   : > { %1521 = vmatprep.mubr.msk.bf16.mxu1 %vm1807_vm1, %v1806_v2 }
 0x275   : > { %v585_v24 = vpop.f32.mrb[0].mxu1 }
 0x276   : > { %v591_v25 = vmul.f32 0.35355338, %v585_v24  ;;  %v1473_v26 = vpop.f32.mrb[1].mxu1 }
 0x277   : > { %v588_v27 = vpop.f32.mrb[2].mxu1 }
 0x278   : > { %v1474_v28 = vpop.f32.mrb[3].mxu1  ;;  %v592_v29 = vsel %vm544_vm3, %v591_v25, -inf }
 0x279   : > { %593 = vmax.xlane.f32.xlu1 %v592_v29 }
 0x27d   : > { %v697_v30 = vpop.f32.mrb[4].mxu1 }
 0x27e   : > { %v703_v31 = vmul.f32 0.35355338, %v697_v30  ;;  %v1485_v32 = vpop.f32.mrb[5].mxu1 }
 0x27f   : > { %v700_v33 = vpop.f32.mrb[6].mxu1 }
 0x280   : > { %v1486_v34 = vpop.f32.mrb[7].mxu1  ;;  %v704_v35 = vsel %vm544_vm3, %v703_v31, -inf }
 0x281   : > { %705 = vmax.xlane.f32.xlu0 %v704_v35 }
 0x285   : > { %v808_v36 = vpop.f32.mrb[8].mxu1 }
 0x286   : > { %v814_v37 = vmul.f32 0.35355338, %v808_v36  ;;  %v1497_v38 = vpop.f32.mrb[9].mxu1 }
 0x287   : > { %v811_v39 = vpop.f32.mrb[10].mxu1  ;;  %v1647_v38 = vld [vmem:[%s2216_s3] sm:$0xff]  }
 0x288   : > { %v1498_v40 = vpop.f32.mrb[11].mxu1  ;;  %v815_v41 = vsel %vm544_vm3, %v814_v37, -inf  ;;  %1518 = vmatpush3.bf16.msra.mxu1 %v1647_v38  ;;  %v1648_v39 = vld [vmem:[%s2216_s3 + $0x8] sm:$0xff]  }
 0x289   : > { %816 = vmax.xlane.f32.xlu0 %v815_v41  ;;  %1519 = vmatprep.subr.bf16.mxu1 %v1806_v2 }
 0x28c   : > { %1520 = vmatpush3.bf16.msra.mxu1 %v1648_v39 }
 0x28d   : > { %v919_v42 = vpop.f32.mrb[12].mxu1  ;;  %1533 = vmatprep.subr.bf16.mxu1 %v1806_v2 }
 0x28e   : > { %v925_v43 = vmul.f32 0.35355338, %v919_v42  ;;  %v1509_v44 = vpop.f32.mrb[13].mxu1 }
 0x28f   : > { %v922_v45 = vpop.f32.mrb[14].mxu1 }
 0x290   : > { %v1510_v46 = vpop.f32.mrb[15].mxu1  ;;  %v926_v47 = vsel %vm544_vm3, %v925_v43, -inf }
 0x291   : > { %927 = vmax.xlane.f32.xlu1 %v926_v47 }
 0x306   : > { %v594_v48 = vpop.xlane.xlu1 %593 }
 0x307   : > { %v595_v49 = vsub.f32 %v591_v25, %v594_v48 }
 0x309   : > { %v596_v50 = vmul.f32 1.442695, %v595_v49 }
 0x30b   : > { %1655 = vpow2.f32 %v596_v50 }
 0x30e   : > { %v706_v51 = vpop.xlane.xlu0 %705 }
 0x30f   : > { %v707_v52 = vsub.f32 %v703_v31, %v706_v51 }
 0x311   : > { %v708_v53 = vmul.f32 1.442695, %v707_v52 }
 0x313   : > { %1657 = vpow2.f32 %v708_v53 }
 0x315   : > { %v1656_v54 = vpop.eup %1655 }
 0x316   : > { %v817_v55 = vpop.xlane.xlu0 %816  ;;  %v598_v56 = vsel %vm544_vm3, %v1656_v54, 0.0 }
 0x317   : > { %v818_v57 = vsub.f32 %v814_v37, %v817_v55  ;;  %599 = vadd.xlane.f32.xlu0 %v598_v56  ;;  %v1408_v55 = vld [vmem:[%s2217_s4] ss:$0 sm:$0xff] }
 0x319   : > { %v819_v58 = vmul.f32 1.442695, %v818_v57 }
 0x31b   : > { %1659 = vpow2.f32 %v819_v58 }
 0x31d   : > { %v1658_v59 = vpop.eup %1657 }
 0x31e   : > { %v710_v60 = vsel %vm544_vm3, %v1658_v59, 0.0  ;;  %v928_v63 = vpop.xlane.xlu1 %927 }
 0x31f   : > { %711 = vadd.xlane.f32.xlu1 %v710_v60  ;;  %v929_v0 = vsub.f32 %v925_v43, %v928_v63 }
 0x321   : > { %v930_v1 = vmul.f32 1.442695, %v929_v0 }
 0x323   : > { %1661 = vpow2.f32 %v930_v1 }
 0x325   : > { %v1660_v61 = vpop.eup %1659 }
 0x326   : > { %v821_v62 = vsel %vm544_vm3, %v1660_v61, 0.0 }
 0x327   : > { %822 = vadd.xlane.f32.xlu0 %v821_v62 }
 0x32d   : > { %v1662_v3 = vpop.eup %1661 }
 0x32e   : > { %v932_v5 = vsel %vm544_vm3, %v1662_v3, 0.0 }
 0x330   : > { %716 = vrot.lane.b32.xlu1 %v2036_v11, %s1815_s25  ;;  %s1820_s25 = smov 16  }
 0x33d   : > { %604 = vrot.lane.b32.xlu0 %v2036_v11, %s1816_s22  ;;  %s1821_s22 = smov 24  }
 0x341   : > { %938 = vrot.lane.b32.xlu0 %v2036_v11, %s1817_s23 }
 0x354   : > { %933 = vadd.xlane.f32.xlu1 %v932_v5 }
 0x365   : > { %827 = vrot.lane.b32.xlu1 %v2036_v11, %s1818_s30 }
 0x3a4   : > { %v600_v6 = vpop.xlane.xlu0 %599 }
 0x3a5   : > { %1663 = vrcp.f32 %v600_v6  ;;  %v1649_v6 = vld [vmem:[#allocation3] sm:$0xff]  }
 0x3ac   : > { %v712_v7 = vpop.xlane.xlu1 %711 }
 0x3ad   : > { %1665 = vrcp.f32 %v712_v7  ;;  %v1650_v7 = vld [vmem:[#allocation3 + $0x8] sm:$0xff]  }
 0x3af   : > { %v1664_v8 = vpop.eup %1663 }
 0x3b0   : > { %v602_v10 = vmul.f32 %v1664_v8, %v1656_v54  ;;  %v717_v14 = vpop.permute.xlu1 %716  ;;  %v1652_v8 = vld [vmem:[%s2220_s7 + $0x8] sm:$0xff]  }
 0x3b1   : > { %v722_v17 = vsel %vm609_vm4, %v717_v14, 0  ;;  %v1412_v14 = vld [vmem:[%s2222_s9] ss:$0 sm:$0xff] }
 0x3b2   : > { %v603_v15 = vpack.c.bf16 %v602_v10, %v602_v10 }
 0x3b4   : > { %v823_v9 = vpop.xlane.xlu0 %822 }
 0x3b5   : > { %1667 = vrcp.f32 %v823_v9 }
 0x3b7   : > { %v1666_v16 = vpop.eup %1665 }
 0x3b8   : > { %v605_v12 = vpop.permute.xlu0 %604  ;;  %v714_v11 = vmul.f32 %v1666_v16, %v1658_v59  ;;  %v1413_v16 = vld [vmem:[%s2223_s10] ss:$0 sm:$0xff] }
 0x3b9   : > { %v611_v13 = vsel %vm609_vm4, %v605_v12, 0 }
 0x3ba   : > { %1476 = vmatpush3.bf16.msra.mxu0 %v611_v13  ;;  %v715_v18 = vpack.c.bf16 %v714_v11, %v714_v11 }
 0x3bb   : > { %1487 = vmatprep.subr.bf16.mxu0 %v1806_v2 }
 0x3bc   : > { %v939_v24 = vpop.permute.xlu0 %938 }
 0x3bd   : > { %1478 = vmatmul.mubr.msk.bf16.vlgmr.msra.gmra.mrb[4].mxu0 %vm544_vm3, %v603_v15  ;;  %v944_v26 = vsel %vm609_vm4, %v939_v24, 0 }
 0x3be   : > { %1488 = vmatpush3.bf16.msra.mxu0 %v722_v17  ;;  %1489 = vmatprep.mubr.msk.bf16.mxu0 %vm1807_vm1, %v1806_v2 }
 0x3bf   : > { %1499 = vmatprep.subr.bf16.mxu0 %v1806_v2  ;;  %v1668_v19 = vpop.eup %1667 }
 0x3c0   : > { %v825_v21 = vmul.f32 %v1668_v19, %v1660_v61  ;;  %v1653_v19 = vld [vmem:[%s2220_s7 + $0x10] sm:$0xff]  }
 0x3c2   : > { %v826_v25 = vpack.c.bf16 %v825_v21, %v825_v21  ;;  %v1414_v21 = vld [vmem:[%s2219_s6] ss:$0 sm:$0xff] }
 0x3c5   : > { %1490 = vmatmul.mubr.msk.bf16.vlgmr.msra.gmra.mrb[8].mxu0 %vm544_vm3, %v715_v18 }
 0x3c6   : > { %1501 = vmatprep.mubr.msk.bf16.mxu0 %vm1807_vm1, %v1806_v2 }
 0x3e1   : > { %v934_v20 = vpop.xlane.xlu1 %933 }
 0x3e2   : > { %1669 = vrcp.f32 %v934_v20  ;;  %v1654_v20 = vld [vmem:[%s2220_s7 + $0x18] sm:$0xff]  }
 0x3e5   : > { %v828_v22 = vpop.permute.xlu1 %827 }
 0x3e6   : > { %v833_v23 = vsel %vm609_vm4, %v828_v22, 0 }
 0x3e7   : > { %1500 = vmatpush3.bf16.msra.mxu0 %v833_v23 }
 0x3e8   : > { %1511 = vmatprep.subr.bf16.mxu0 %v1806_v2 }
 0x3ea   : > { %1502 = vmatmul.mubr.msk.bf16.vlgmr.msra.gmra.mrb[12].mxu0 %vm544_vm3, %v826_v25 }
 0x3eb   : > { %1512 = vmatpush3.bf16.msra.mxu0 %v944_v26  ;;  %1513 = vmatprep.mubr.msk.bf16.mxu0 %vm1807_vm1, %v1806_v2 }
 0x3ec   : > { %v1670_v27 = vpop.eup %1669  ;;  %1525 = vmatprep.subr.bf16.mxu0 %v1806_v2 }
 0x3ed   : > { %v936_v28 = vmul.f32 %v1670_v27, %v1662_v3 }
 0x3ef   : > { %v937_v29 = vpack.c.bf16 %v936_v28, %v936_v28 }
 0x3f2   : > { %1514 = vmatmul.mubr.msk.bf16.vlgmr.msra.gmra.mrb[16].mxu0 %vm544_vm3, %v937_v29 }
 0x3f3   : > { %1529 = vmatprep.mubr.msk.bf16.mxu0 %vm1807_vm1, %v1806_v2  ;;  %1526 = vmatpush3.bf16.msra.mxu0 %v1649_v6 }
 0x3f4   : > { %1527 = vmatprep.subr.bf16.mxu0 %v1806_v2 }
 0x3f7   : > { %1528 = vmatpush3.bf16.msra.mxu0 %v1650_v7 }
 0x490   : > { %v647_v30 = vpop.f32.mrb[4].mxu0 }
 0x491   : > { %v1479_v31 = vpop.f32.mrb[5].mxu0 }
 0x492   : > { %v650_v32 = vpop.f32.mrb[6].mxu0 }
 0x493   : > { %v1480_v33 = vpop.f32.mrb[7].mxu0 }
 0x498   : > { %v758_v34 = vpop.f32.mrb[8].mxu0 }
 0x499   : > { %987 = vrot.lane.b32.xlu1 %v758_v34, %s1819_s20  ;;  %v1491_v35 = vpop.f32.mrb[9].mxu0 }
 0x49a   : > { %v761_v36 = vpop.f32.mrb[10].mxu0 }
 0x49b   : > { %v1492_v37 = vpop.f32.mrb[11].mxu0 }
 0x4bd   : > { %v869_v40 = vpop.f32.mrb[12].mxu0 }
 0x4be   : > { %991 = vrot.lane.b32.xlu0 %v869_v40, %s1820_s25  ;;  %v1503_v41 = vpop.f32.mrb[13].mxu0 }
 0x4bf   : > { %v872_v42 = vpop.f32.mrb[14].mxu0 }
 0x4c0   : > { %v1504_v43 = vpop.f32.mrb[15].mxu0 }
 0x4c5   : > { %v980_v44 = vpop.f32.mrb[16].mxu0 }
 0x4c6   : > { %995 = vrot.lane.b32.xlu1 %v980_v44, %s1821_s22  ;;  %v1515_v45 = vpop.f32.mrb[17].mxu0 }
 0x4c7   : > { %v983_v46 = vpop.f32.mrb[18].mxu0  ;;  %v1424_v45 = vld [vmem:[%s2224_s11] ss:$0 sm:$0xff] }
 0x4c8   : > { %v1516_v47 = vpop.f32.mrb[19].mxu0 }
 0x4c9   : > { %v1425_v47 = vld [vmem:[%s2225_s12] ss:$0 sm:$0xff] }
 0x50b   : > { %v988_v48 = vpop.permute.xlu1 %987 }
 0x50c   : > { %v998_v50 = vsel %vm544_vm3, %v647_v30, %v988_v48 }
 0x530   : > { %v992_v49 = vpop.permute.xlu0 %991 }
 0x531   : > { %v1000_v51 = vsel %vm999_vm5, %v998_v50, %v992_v49 }
 0x538   : > { %v996_v52 = vpop.permute.xlu1 %995 }
 0x539   : > { %v1002_v53 = vsel %vm1001_vm6, %v1000_v51, %v996_v52 }
 0x53a   : > { %v1003_v54 = vpack.c.bf16 %v1002_v53, %v1002_v53 }
 0x53c   : > { %1522 = vmatmul.mubr.msk.bf16.vlgmr.msra.gmra.mrb[16].mxu1 %vm496_vm2, %v1003_v54 }
 0x53d   : > { %1541 = vmatprep.mubr.msk.bf16.mxu1 %vm1807_vm1, %v1806_v2 }
 0x60f   : > { %v1064_v56 = vpop.f32.mrb[16].mxu1 }
 0x610   : > { %v1065_v57 = vadd.f32 %v1408_v55, %v1064_v56  ;;  %v1523_v58 = vpop.f32.mrb[17].mxu1 }
 0x611   : > { %v1067_v59 = vpop.f32.mrb[18].mxu1 }
 0x612   : > { %v1524_v60 = vpop.f32.mrb[19].mxu1  ;;  %v1070_v61 = vadd.f32 %v1065_v57, %v2022_v4  ;;  %v1651_v4 = vld [vmem:[%s2220_s7] sm:$0xff]  }
 0x613   : > { %1534 = vmatpush3.bf16.msra.mxu1 %v1651_v4 }
 0x614   : > { %v1073_v62 = vsel %vm496_vm2, %v1070_v61, 0.0  ;;  %1535 = vmatprep.subr.bf16.mxu1 %v1806_v2 }
 0x615   : > { %1074 = vadd.xlane.f32.xlu0 %v1073_v62 }
 0x617   : > { %1536 = vmatpush3.bf16.msra.mxu1 %v1652_v8 }
 0x618   : > { %1537 = vmatprep.subr.bf16.mxu1 %v1806_v2 }
 0x61b   : > { %1538 = vmatpush3.bf16.msra.mxu1 %v1653_v19 }
 0x61c   : > { %1539 = vmatprep.subr.bf16.mxu1 %v1806_v2  ;;  %v1423_v2 = vld [vmem:[%s2221_s8] ss:$0 sm:$0xff] }
 0x61f   : > { %1540 = vmatpush3.bf16.msra.mxu1 %v1654_v20 }
 0x6a2   : > { %v1075_v63 = vpop.xlane.xlu0 %1074 }
 0x6a3   : > { %v1077_v0 = vmul.f32 0.03125, %v1075_v63 }
 0x6a5   : > { %v1078_v1 = vsub.f32 %v1070_v61, %v1077_v0 }
 0x6a7   : > { %v1079_v3 = vmul.f32 %v1078_v1, %v1078_v1 }
 0x6a9   : > { %v1080_v5 = vsel %vm496_vm2, %v1079_v3, 0.0 }
 0x6aa   : > { %1081 = vadd.xlane.f32.xlu1 %v1080_v5 }
 0x737   : > { %v1082_v9 = vpop.xlane.xlu1 %1081 }
 0x738   : > { %v1083_v10 = vmul.f32 0.03125, %v1082_v9 }
 0x73a   : > { %v1084_v12 = vadd.f32 1e-05, %v1083_v10 }
 0x73c   : > { %1671 = vrsqrt.f32 %v1084_v12 }
 0x746   : > { %v1672_v13 = vpop.eup %1671 }
 0x747   : > { %v1086_v15 = vmul.f32 %v1672_v13, %v1078_v1 }
 0x749   : > { %v1093_v17 = vmul.f32 %v1412_v14, %v1086_v15 }
 0x74b   : > { %v1100_v11 = vadd.f32 %v1413_v16, %v1093_v17 }
 0x74d   : > { %v1101_v18 = vpack.c.bf16 %v1100_v11, %v1100_v11 }
 0x74f   : > { %1530 = vmatmul.mubr.msk.bf16.vlgmr.msra.gmra.mrb[20].mxu0 %vm496_vm2, %v1101_v18 }
 0x822   : > { %v1162_v22 = vpop.f32.mrb[20].mxu0 }
 0x823   : > { %v1163_v23 = vadd.f32 %v1414_v21, %v1162_v22  ;;  %v1531_v24 = vpop.f32.mrb[21].mxu0 }
 0x824   : > { %v1165_v25 = vpop.f32.mrb[22].mxu0 }
 0x825   : > { %v1168_v26 = vmax.f32 %v1163_v23, 0.0  ;;  %v1532_v27 = vpop.f32.mrb[23].mxu0 }
 0x827   : > { %v1169_v28 = vpack.c.bf16 %v1168_v26, %v1168_v26 }
 0x829   : > { %1542 = vmatmul.mubr.msk.bf16.vlgmr.msra.gmra.mrb[20].mxu1 %vm1202_vm7, %v1169_v28 }
 0x8fc   : > { %v1240_v29 = vpop.f32.mrb[20].mxu1 }
 0x8fd   : > { %v1246_v30 = vadd.f32 %v1240_v29, %v1100_v11  ;;  %v1543_v31 = vpop.f32.mrb[21].mxu1 }
 0x8fe   : > { %v1243_v32 = vpop.f32.mrb[22].mxu1 }
 0x8ff   : > { %v1544_v33 = vpop.f32.mrb[23].mxu1  ;;  %v1254_v34 = vadd.f32 %v1423_v2, %v1246_v30 }
 0x901   : > { %v1257_v35 = vsel %vm496_vm2, %v1254_v34, 0.0 }
 0x902   : > { %1258 = vadd.xlane.f32.xlu0 %v1257_v35 }
 0x98f   : > { %v1259_v36 = vpop.xlane.xlu0 %1258 }
 0x990   : > { %v1260_v37 = vmul.f32 0.03125, %v1259_v36 }
 0x992   : > { %v1261_v38 = vsub.f32 %v1254_v34, %v1260_v37 }
 0x994   : > { %v1262_v39 = vmul.f32 %v1261_v38, %v1261_v38 }
 0x996   : > { %v1263_v40 = vsel %vm496_vm2, %v1262_v39, 0.0 }
 0x997   : > { %1264 = vadd.xlane.f32.xlu0 %v1263_v40 }
 0xa24   : > { %v1265_v41 = vpop.xlane.xlu0 %1264 }
 0xa25   : > { %v1266_v42 = vmul.f32 0.03125, %v1265_v41 }
 0xa27   : > { %v1267_v43 = vadd.f32 1e-05, %v1266_v42 }
 0xa29   : > { %1673 = vrsqrt.f32 %v1267_v43 }
 0xa33   : > { %v1674_v44 = vpop.eup %1673 }
 0xa34   : > { %v1269_v46 = vmul.f32 %v1674_v44, %v1261_v38  ;;  %1288 = sbr.rel (%p1426_p10) target bundleno = 2619 (0xa3b), region = 84 }
 0xa36   : > { %v1276_v48 = vmul.f32 %v1424_v45, %v1269_v46 }
 0xa38   : > { %v1283_v49 = vadd.f32 %v1425_v47, %v1276_v48 }
 0xa3a   : > { %1284 = vst.msk [vmem:[#allocation2] sm:$0xff] %vm496_vm2, %v1283_v49  ;;  %1289 = vst.msk [vmem:[%s458_s15] sm:$0xff] (!%p1426_p10), %vm496_vm2, %v1283_v49 }
 0xa3b PF: > { %s1428_s19 = sshll.u32 %s1789_s29, 7  ;;  %s1304_s22 = sshll.u32 %s458_s15, 4  ;;  %s1305_s22 = int_to_ptr.vmem [resolvable:$true] %s1304_s22 }
 0xa3c   : > { %s2162_s25 = scalar_lea.hbm %s2226_s13, %s1428_s19  ;;  %s1291_s28 = scalar_lea.sflag [#allocation5], %s456_s14 }
 0xa3d   : > { %s1703_s23 = scalar_lea.vmem %s1305_s22, 128  ;;  %p2253_p0 = scmp.ne.s32.totalorder %s2243_s21, 0 }
 0xa3e   : > { %p1704_p13 = scmp.ne.s32.totalorder %s1305_s22, %s1703_s23  ;;  %s1822_s30 = smov [#allocation6]  }
 0xa3f   : > { %s1707_s20 = sshll.u32 %s1822_s30, 4  ;;  %s1708_s20 = int_to_ptr.vmem [resolvable:$false] %s1707_s20 }
 0xa40   : > { %p1705_p2 = pnand %p1704_p13, %p2253_p0  ;;  %s1709_s17 = scalar_lea.vmem %s1708_s20, 256 }
 0xa41   : > { %p1710_p6 = scmp.lt.s32.totalorder %s1305_s22, %s1708_s20  ;;  %p1711_p7 = scmp.lt.s32.totalorder %s1709_s17, %s1703_s23 }
 0xa42   : > { %p1706_p5 = pneg %p1705_p2 }
 0xa43   : > { %p1712_p8 = por %p1711_p7, %p1710_p6 }
 0xa45   : > { %p1713_p11 = pnand %p1712_p8, %p1706_p5 }
 0xa47   : > { %1716 = shalt.err (!%p1713_p11)
}
 0xa48   : > { %s1717_s29 = scalar_lea.hbm %s2162_s25, 128  ;;  %s1721_s15 = scalar_lea.hbm %s2226_s13, 256 }
 0xa49   : > { %p1718_p12 = scmp.ne.s32.totalorder %s2162_s25, %s1717_s29  ;;  %p1722_p3 = scmp.lt.u32.totalorder %s2162_s25, %s2226_s13 }
 0xa4a   : > { %p1723_p9 = scmp.lt.u32.totalorder %s1721_s15, %s1717_s29  ;;  %p1725_p13 = scmp.lt.u32.totalorder %s1717_s29, %s2162_s25 }
 0xa4b   : > { %p1719_p1 = pnand %p1718_p12, %p2253_p0 }
 0xa4c   : > { %p1724_p10 = por %p1723_p9, %p1722_p3 }
 0xa4d   : > { %p1720_p4 = pneg %p1719_p1 }
 0xa4e   : > { %p1726_p2 = por %p1725_p13, %p1724_p10 }
 0xa50   : > { %p1727_p5 = pnand %p1726_p2, %p1720_p4 }
 0xa52   : > { %1730 = shalt.err (!%p1727_p5)
}
 0xa53   : > { %1549 = dma.vmem_to_hbm [thread:$0]  (%p2253_p0), %s1305_s22, 128, %s2162_s25, %s1291_s28  }
 0xa54 PF: > { %s2254_s16 = sld [smem:[#allocation12_spill]]  ;;  %s2255_s23 = sld [smem:[#allocation9_spill]] }
 0xa55   : > { %s2256_s30 = sld [smem:[#allocation15_spill]] }
 0xa5a   : > { %p1561_p6 = scmp.ge.s32.totalorder %s2254_s16, 2  ;;  %s1316_s20 = sand.u32 1, %s2255_s23  }
 0xa5b   : > { %p2257_p7 = scmp.ne.s32.totalorder %s2256_s30, 0  ;;  %s1317_s17 = scalar_lea.sflag [#allocation5], %s1316_s20 }
 0xa5d   : > { %p1556_p8 = pnand %p1561_p6, %p2257_p7 }
 0xa5f   : > { %1768 = dma.done.wait (!%p1556_p8), %s1317_s17, 128  }
 0xa60   : > { %1770 = vsyncadd (!%p1556_p8), %s1317_s17, 4294967168  ;;  %s27_s15 = sadd.s32 1, %s2254_s16   ;;  %s2258_s29 = sld [smem:[#allocation16_spill]] }
 0xa61   : > { %p24_p11 = scmp.ge.s32.totalorder %s27_s15, 6   ;;  %s2259_s28 = sld [smem:[#allocation10_spill]] }
 0xa62   : > { %s2260_s21 = sld [smem:[#allocation11_spill]]  ;;  %s2261_s30 = sld [smem:[#allocation13_spill]] }
 0xa63   : > { %s2262_s14 = sld [smem:[#allocation14_spill]]  ;;  %s2263_s25 = smov %s1777_s26 }
 0xa64   : > { %s2264_s26 = smov %s1781_s27  ;;  %26 = sbr.rel (!%p24_p11) target bundleno = 6 (0x6), region = 120 }
 0xa66   : > { %s2265_s27 = smov %s2258_s29 }
 0xa68   : > { %s2266_s29 = smov %s2260_s21 }
 0xa6b   :  { %1322 = vsyncpa [#allocation4], 1 }
 0xa6c   :  { %1324 = vsyncpa [#allocation4 + $0x1], 1 }
 0xa6d   :  { %1325 = vsyncpa [#allocation5], 1 }
 0xa6e   :  { %1327 = vsyncpa [#allocation5 + $0x1], 1 }

</bundles_post_ra>
